<compile_context>
chip_gen: v6e
topology: v6e:2x2x1
jax: 0.10.0
libtpu: 0.0.40
codegen_flags: <defaults>
</compile_context>

<pallas_src>
import jax
import jax.numpy as jnp
from jax.experimental import pallas as pl
from jax.experimental.pallas import tpu as pltpu

OUT_H, OUT_W = 480, 640   # hard-coded in the PyTorch module
OH_TILE = 120             # 480 / 120 = 4 output-row tiles per channel block


def _pool_broadcast_kernel(x_ref, o_ref):
    # x_ref: (CB, H, W) input channel block (resident across the OH-tile axis)
    # o_ref: (CB, OH_TILE, OUT_W) output tile for the same channels
    cb, h, w = x_ref.shape
    inv = 1.0 / float(h * w)
    x = x_ref[...].astype(jnp.float32)
    # staged reduction: sublane axis (H) first, then lane axis (W)
    s = jnp.sum(jnp.sum(x, axis=1), axis=-1)          # (CB,) f32 accumulate
    # cast the per-channel scalar BEFORE broadcasting -> no per-pixel converts
    m = (s * inv).astype(o_ref.dtype)                  # (CB,)
    # bilinear upsample of a 1x1 map (align_corners=True) == constant broadcast
    o_ref[...] = jnp.broadcast_to(m[:, None, None], o_ref.shape)


def _pick_cb(nc, cap=8):
    """Largest divisor of nc that is <= cap.

    With the OH split the total grid is always >= 4 steps (>= 2 per v7x
    TensorCore), and even cb=8 is only ~2 * 2.5 MB of double-buffered f32
    output, so the cap is a simple amortization knob, not a VMEM constraint.
    """
    cap = max(1, min(cap, nc))
    for cb in range(cap, 0, -1):
        if nc % cb == 0:
            return cb
    return 1


def mynet_forward(x):
    """x: (N, C, H, W) float array -> (N, C, 480, 640)."""
    n, c, h, w = x.shape
    nc = n * c
    xr = x.reshape(nc, h, w)

    cb = _pick_cb(nc, cap=8)
    grid = (nc // cb, OUT_H // OH_TILE)

    dsize = jnp.dtype(x.dtype).itemsize
    cost = pl.CostEstimate(
        flops=nc * h * w,  # the reduce+scale; the rest is pure data movement
        bytes_accessed=nc * (h * w + OUT_H * OUT_W) * dsize,
        transcendentals=0,
    )

    out = pl.pallas_call(
        _pool_broadcast_kernel,
        out_shape=jax.ShapeDtypeStruct((nc, OUT_H, OUT_W), x.dtype),
        grid_spec=pltpu.PrefetchScalarGridSpec(
            num_scalar_prefetch=0,
            grid=grid,
            # input block ignores the OH-tile axis -> stays resident across j
            in_specs=[pl.BlockSpec((cb, h, w), lambda i, j: (i, 0, 0))],
            out_specs=pl.BlockSpec((cb, OH_TILE, OUT_W), lambda i, j: (i, j, 0)),
        ),
        compiler_params=pltpu.CompilerParams(
            dimension_semantics=("parallel", "parallel"),
        ),
        cost_estimate=cost,
    )(xr)
    return out.reshape(n, c, OUT_H, OUT_W)


if __name__ == "__main__":
    key = jax.random.PRNGKey(0)
    # Small input consistent with the module's NCHW forward (batch=2, channels=4,
    # spatial=16x16). Output spatial size is fixed at (480, 640) by the module.
    x = jax.random.normal(key, (2, 4, 16, 16), dtype=jnp.float32)

    y = mynet_forward(x)
    y = jax.block_until_ready(y)

    # Reference: global mean per (n, c), broadcast to (480, 640).
    ref = jnp.broadcast_to(
        jnp.mean(x, axis=(2, 3), keepdims=True), (2, 4, OUT_H, OUT_W)
    )
    assert y.shape == (2, 4, OUT_H, OUT_W)
    assert jnp.allclose(y, ref, atol=1e-5, rtol=1e-5)

    print("KERNEL_OK")
</pallas_src>

<mosaic_0001>
module attributes {stable_mosaic.version = 11 : i64} {
  func.func @_pool_broadcast_kernel(%arg0: i32, %arg1: i32, %arg2: memref<8x16x16xf32, #tpu.memory_space<vmem>>, %arg3: memref<8x120x640xf32, #tpu.memory_space<vmem>>) attributes {dimension_semantics = [#tpu.dimension_semantics<parallel>, #tpu.dimension_semantics<parallel>], iteration_bounds = array<i64: 1, 4>, scalar_prefetch = 0 : i64, scratch_operands = 0 : i64, tpu.core_type = #tpu.core_type<tc>, window_params = [{transform_indices = @transform_0, window_bounds = array<i64: 8, 16, 16>}, {transform_indices = @transform_1, window_bounds = array<i64: 8, 120, 640>}]} {
    %c0 = arith.constant 0 : index
    %c0_0 = arith.constant 0 : index
    %c0_1 = arith.constant 0 : index
    %0 = vector.load %arg2[%c0, %c0_0, %c0_1] : memref<8x16x16xf32, #tpu.memory_space<vmem>>, vector<8x16x16xf32>
    %cst = arith.constant dense<0.000000e+00> : vector<8x16xf32>
    %1 = vector.multi_reduction <add>, %0, %cst [1] : vector<8x16x16xf32> to vector<8x16xf32>
    %cst_2 = arith.constant dense<0.000000e+00> : vector<8xf32>
    %2 = vector.multi_reduction <add>, %1, %cst_2 [1] : vector<8x16xf32> to vector<8xf32>
    %cst_3 = arith.constant 3.906250e-03 : f32
    %3 = vector.broadcast %cst_3 : f32 to vector<8xf32>
    %4 = arith.mulf %2, %3 : vector<8xf32>
    %5 = vector.shape_cast %4 : vector<8xf32> to vector<8x1x1xf32>
    %6 = vector.shape_cast %5 : vector<8x1x1xf32> to vector<8x1x1xf32>
    %7 = vector.broadcast %6 : vector<8x1x1xf32> to vector<8x120x640xf32>
    %c0_4 = arith.constant 0 : index
    %c0_5 = arith.constant 0 : index
    %c0_6 = arith.constant 0 : index
    %8 = vector.load %arg3[%c0_4, %c0_5, %c0_6] : memref<8x120x640xf32, #tpu.memory_space<vmem>>, vector<8x120x640xf32>
    tpu.vector_store %arg3[%c0_4, %c0_5, %c0_6], %7 {strides = array<i32>} : memref<8x120x640xf32, #tpu.memory_space<vmem>>, vector<8x120x640xf32>,
    return
  }
  func.func @transform_0(%arg0: i32, %arg1: i32) -> (i32, i32, i32) {
    %c0_i32 = arith.constant 0 : i32
    %c0_i32_0 = arith.constant 0 : i32
    %c0_i32_1 = arith.constant 0 : i32
    return %arg0, %c0_i32, %c0_i32_0 : i32, i32, i32
  }
  func.func @transform_1(%arg0: i32, %arg1: i32) -> (i32, i32, i32) {
    %c0_i32 = arith.constant 0 : i32
    %c0_i32_0 = arith.constant 0 : i32
    return %arg0, %arg1, %c0_i32 : i32, i32, i32
  }
}

</mosaic_0001>

<bundles_post_ra>
// kernel: tpu_custom_call.1
= control target key start
LH: loop header
LB: loop body
LE: loop exit
PB: predicated region body
PF: predicated region fallthrough
CT: control target
= control target key end

     0   :  { %6 = vsyncpa [#allocation3], 0  ;;  %s2563_s0 = inlined_call_operand.hbm [shape: f32[8,16,16], index: 0, kind: input, shape index: {}]   ;;  %s2564_s1 = inlined_call_operand.hbm [shape: f32[8,480,640], index: 1, kind: output, shape index: {}]  }
   0x1   :  { %7 = vsyncpa [#allocation4], 0 }
   0x2   :  { %9 = vsyncpa [#allocation4 + $0x1], 0  ;;  %s1204_s6 = smov 0   ;;  %s1206_s7 = smov 0  }
   0x3   :  { %s1208_s8 = smov 0   ;;  %s1210_s9 = smov 0  }
   0x4   :  { %s1212_s10 = smov 0   ;;  %s1214_s11 = smov 0  }
   0x5 LB: > { %s1009_s12 = sadd.s32 4294967295, %s1182_s11   ;;  %s1010_s13 = sadd.s32 4294967294, %s1182_s11   ;;  %s1182_s11 = sphi %s1214_s11, %s15_s11   ;;  %s1178_s10 = sphi %s1212_s10, %s2573_s10   ;;  %s1174_s9 = sphi %s1210_s9, %s2572_s9   ;;  %s1170_s8 = sphi %s1208_s8, %s2571_s8   ;;  %s1166_s7 = sphi %s1206_s7, %s2570_s7   ;;  %s1162_s6 = sphi %s1204_s6, %s2569_s6  }
   0x6   : > { %s24_s14 = sadd.s32 1, %s1178_s10  ;;  %s62_s15 = sadd.s32 1, %s1170_s8 }
   0x7   : > { %p25_p0 = scmp.ge.s32.totalorder %s24_s14, 4  ;;  %p72_p1 = scmp.ne.s32.totalorder %s1170_s8, %s1166_s7 }
   0x8   : > { %p73_p2 = scmp.eq.s32.totalorder %s1009_s12, 3  ;;  %p78_p3 = scmp.ne.s32.totalorder %s1166_s7, %s1162_s6 }
   0x9   : > { %s2575_s14 = smov (%p25_p0, %s24_s14), 0  ;;  %p79_p5 = scmp.eq.s32.totalorder %s1010_s13, 3 }
   0xa   : > { %p1244_p4 = por %p73_p2, %p72_p1  ;;  %s58_s17 = ssub.s32 %s1178_s10, %s2575_s14 }
   0xb   : > { %p1011_p6 = scmp.ge.s32.totalorder %s1182_s11, 1  ;;  %p60_p7 = scmp.eq.s32.totalorder %s58_s17, 0 }
   0xc   : > { %p1251_p8 = por %p79_p5, %p78_p3  ;;  %p86_p9 = scmp.lt.s32.totalorder %s1182_s11, 5 }
   0xd   : > { %s1257_s19 = scalar_select %p60_p7, %s1170_s8, %s62_s15  }
   0xe   : > { %p1259_p10 = pnand %p1011_p6, %p86_p9  ;;  %p1263_p11 = scmp.eq.s32.totalorder %s1009_s12, 0 }
   0xf   : > { %s1184_s22 = smov [#allocation2]  }
  0x10   : > { %p1032_p12 = pneg %p1259_p10  ;;  %s102_s23 = sshll.u32 %s1184_s22, 4  ;;  %s103_s23 = int_to_ptr.vmem [resolvable:$true] %s102_s23 }
  0x11   : > { %s1113_s24 = scalar_lea.vmem %s103_s23, 2048  ;;  %p1121_p5 = scmp.lt.s32.totalorder %s103_s23, %s103_s23 }
  0x12   : > { %p1033_p13 = pnand %p1263_p11, %p1032_p12  ;;  %p1114_p1 = scmp.ne.s32.totalorder %s103_s23, %s1113_s24 }
  0x13   : > { %p1122_p6 = scmp.lt.s32.totalorder %s1113_s24, %s1113_s24 }
  0x14   : > { %p1104_p0 = pneg %p1033_p13 }
  0x15   : > { %p1123_p7 = por %p1122_p6, %p1121_p5 }
  0x16   : > { %p1116_p2 = pnand %p1114_p1, %p1104_p0 }
  0x18   : > { %p1117_p3 = pneg %p1116_p2 }
  0x1a   : > { %p1124_p9 = pnand %p1123_p7, %p1117_p3 }
  0x1c   : > { %1127 = shalt.err (!%p1124_p9)
}
  0x1d   : > { %s1185_s25 = smov 128   ;;  %s1186_s26 = smov 8  }
  0x1e   : > { %1035 = dma.hbm_to_vmem [thread:$0]  (!%p1033_p13), %s2563_s0, 2048, %s103_s23, [#allocation3], %s1185_s25, %s1185_s25, %s1186_s26  }
  0x1f   : > { %118 = sbr.rel (%p1259_p10) target bundleno = 517 (0x205), region = 24 }
  0x24   : > { %1153 = dma.done.wait (%p1263_p11), [#allocation3], 2048  }
  0x25   : > { %1155 = vsyncadd (%p1263_p11), [#allocation3], 4294965248  ;;  %vm152_vm0 = vcmask 130048   ;;  %v136_v0 = vld [vmem:[#allocation2] sm:$0xff]  ;;  %v137_v1 = vld [vmem:[#allocation2 + $0x8] sm:$0xff]  ;;  %vm233_vm1 = vcmask 1041409  }
  0x26   : > { %v138_v2 = vld [vmem:[#allocation2 + $0x10] sm:$0xff]  ;;  %v139_v3 = vld [vmem:[#allocation2 + $0x18] sm:$0xff]  ;;  %v140_v4 = vld [vmem:[#allocation2 + $0x20] sm:$0xff]  ;;  %v153_v6 = vsel %vm152_vm0, %v136_v0, 0.0  ;;  %v154_v7 = vsel %vm152_vm0, %v137_v1, 0.0  ;;  %vm235_vm2 = vcmask 1042434  }
  0x27   : > { %v141_v5 = vld [vmem:[#allocation2 + $0x28] sm:$0xff]  ;;  %v162_v8 = vsel %vm152_vm0, %v138_v2, 0.0  ;;  %v142_v9 = vld [vmem:[#allocation2 + $0x30] sm:$0xff]  ;;  %v143_v10 = vld [vmem:[#allocation2 + $0x38] sm:$0xff]  ;;  %v155_v12 = vadd.f32 %v154_v7, %v153_v6  ;;  %v163_v13 = vsel %vm152_vm0, %v139_v3, 0.0  ;;  %v171_v14 = vsel %vm152_vm0, %v140_v4, 0.0 }
  0x28   : > { %v144_v11 = vld [vmem:[#allocation2 + $0x40] sm:$0xff]  ;;  %v172_v15 = vsel %vm152_vm0, %v141_v5, 0.0  ;;  %v145_v16 = vld [vmem:[#allocation2 + $0x48] sm:$0xff]  ;;  %v146_v17 = vld [vmem:[#allocation2 + $0x50] sm:$0xff]  ;;  %v164_v19 = vadd.f32 %v163_v13, %v162_v8  ;;  %v180_v21 = vsel %vm152_vm0, %v142_v9, 0.0  ;;  %v181_v22 = vsel %vm152_vm0, %v143_v10, 0.0 }
  0x29   : > { %v147_v18 = vld [vmem:[#allocation2 + $0x58] sm:$0xff]  ;;  %v173_v20 = vadd.f32 %v172_v15, %v171_v14  ;;  %v148_v23 = vld [vmem:[#allocation2 + $0x60] sm:$0xff]  ;;  %v156_v24 = vrot.slane %v155_v12, 4  ;;  %v182_v25 = vadd.f32 %v181_v22, %v180_v21  ;;  %v189_v26 = vsel %vm152_vm0, %v144_v11, 0.0  ;;  %v149_v28 = vld [vmem:[#allocation2 + $0x68] sm:$0xff]  ;;  %s130_s29 = sand.u32 1, %s1166_s7  }
  0x2a   : > { %v190_v27 = vsel %vm152_vm0, %v145_v16, 0.0  ;;  %v150_v29 = vld [vmem:[#allocation2 + $0x70] sm:$0xff]  ;;  %v165_v30 = vrot.slane %v164_v19, 4  ;;  %v198_v33 = vsel %vm152_vm0, %v146_v17, 0.0  ;;  %v199_v36 = vsel %vm152_vm0, %v147_v18, 0.0  ;;  %v151_v38 = vld [vmem:[#allocation2 + $0x78] sm:$0xff] }
  0x2b   : > { %v174_v31 = vrot.slane %v173_v20, 4  ;;  %v191_v32 = vadd.f32 %v190_v27, %v189_v26  ;;  %v157_v34 = vadd.f32 %v156_v24, %v155_v12  ;;  %v183_v35 = vrot.slane %v182_v25, 4  ;;  %s1018_s30 = smul.u32 4800, %s130_s29  ;;  %s894_s3 = scalar_lea.sflag [#allocation4], %s130_s29 }
  0x2c   : > { %v207_v37 = vsel %vm152_vm0, %v148_v23, 0.0  ;;  %v166_v39 = vadd.f32 %v165_v30, %v164_v19  ;;  %v200_v42 = vadd.f32 %v199_v36, %v198_v33  ;;  %v208_v45 = vsel %vm152_vm0, %v149_v28, 0.0 }
  0x2d   : > { %v175_v40 = vadd.f32 %v174_v31, %v173_v20  ;;  %v192_v41 = vrot.slane %v191_v32, 4  ;;  %v158_v43 = vrot.slane %v157_v34, 2  ;;  %v184_v44 = vadd.f32 %v183_v35, %v182_v25  ;;  %s1318_s2 = scalar_lea.vmem [#allocation5], %s1018_s30 }
  0x2e   : > { %v216_v46 = vsel %vm152_vm0, %v150_v29, 0.0  ;;  %v167_v47 = vrot.slane %v166_v39, 2  ;;  %v201_v50 = vrot.slane %v200_v42, 4  ;;  %v209_v53 = vadd.f32 %v208_v45, %v207_v37 }
  0x2f   : > { %v176_v48 = vrot.slane %v175_v40, 2  ;;  %v193_v49 = vadd.f32 %v192_v41, %v191_v32  ;;  %v159_v51 = vadd.f32 %v158_v43, %v157_v34  ;;  %v185_v52 = vrot.slane %v184_v44, 2 }
  0x30   : > { %v217_v54 = vsel %vm152_vm0, %v151_v38, 0.0  ;;  %v168_v55 = vadd.f32 %v167_v47, %v166_v39  ;;  %v202_v58 = vadd.f32 %v201_v50, %v200_v42  ;;  %v210_v61 = vrot.slane %v209_v53, 4 }
  0x31   : > { %v177_v56 = vadd.f32 %v176_v48, %v175_v40  ;;  %v194_v57 = vrot.slane %v193_v49, 2  ;;  %v160_v59 = vrot.slane %v159_v51, 1  ;;  %v186_v60 = vadd.f32 %v185_v52, %v184_v44 }
  0x32   : > { %v218_v62 = vadd.f32 %v217_v54, %v216_v46  ;;  %v169_v63 = vrot.slane %v168_v55, 1  ;;  %v203_v2 = vrot.slane %v202_v58, 2  ;;  %v211_v5 = vadd.f32 %v210_v61, %v209_v53 }
  0x33   : > { %v178_v0 = vrot.slane %v177_v56, 1  ;;  %v195_v1 = vadd.f32 %v194_v57, %v193_v49  ;;  %v161_v3 = vadd.f32 %v160_v59, %v159_v51  ;;  %v187_v4 = vrot.slane %v186_v60, 1 }
  0x34   : > { %v219_v6 = vrot.slane %v218_v62, 4  ;;  %v170_v7 = vadd.f32 %v169_v63, %v168_v55  ;;  %v204_v10 = vadd.f32 %v203_v2, %v202_v58  ;;  %v212_v12 = vrot.slane %v211_v5, 2 }
  0x35   : > { %v179_v8 = vadd.f32 %v178_v0, %v177_v56  ;;  %v196_v9 = vrot.slane %v195_v1, 1  ;;  %v188_v11 = vadd.f32 %v187_v4, %v186_v60  ;;  %vm237_vm3 = vcmask 1043459  }
  0x36   : > { %v220_v13 = vadd.f32 %v219_v6, %v218_v62  ;;  %v205_v15 = vrot.slane %v204_v10, 1  ;;  %v234_v16 = vsel %vm233_vm1, %v170_v7, %v161_v3  ;;  %vm239_vm4 = vcmask 1044484  }
  0x37   : > { %v197_v14 = vadd.f32 %v196_v9, %v195_v1  ;;  %v213_v17 = vadd.f32 %v212_v12, %v211_v5  ;;  %v236_v19 = vsel %vm235_vm2, %v179_v8, %v234_v16  ;;  %vm241_vm5 = vcmask 1045509  }
  0x38   : > { %v221_v18 = vrot.slane %v220_v13, 2  ;;  %v206_v20 = vadd.f32 %v205_v15, %v204_v10  ;;  %v238_v21 = vsel %vm237_vm3, %v188_v11, %v236_v19  ;;  %vm243_vm6 = vcmask 1046534  }
  0x39   : > { %v214_v22 = vrot.slane %v213_v17, 1  ;;  %v240_v24 = vsel %vm239_vm4, %v197_v14, %v238_v21  ;;  %vm245_vm7 = vcmask 1047559   ;;  %v253_v32 = vlaneseq }
  0x3a   : > { %v222_v23 = vadd.f32 %v221_v18, %v220_v13  ;;  %v242_v25 = vsel %vm241_vm5, %v206_v20, %v240_v24 }
  0x3b   : > { %v215_v26 = vadd.f32 %v214_v22, %v213_v17  ;;  %v254_v33 = vshrl.u32 %v253_v32, 7 }
  0x3c   : > { %v223_v27 = vrot.slane %v222_v23, 1 }
  0x3d   : > { %v244_v29 = vsel %vm243_vm6, %v215_v26, %v242_v25  ;;  %v255_v34 = vsub.s32 0, %v254_v33  ;;  %v259_v35 = vsub.s32 1, %v254_v33  ;;  %v263_v36 = vsub.s32 2, %v254_v33 }
  0x3e   : > { %v224_v28 = vadd.f32 %v223_v27, %v222_v23  ;;  %v267_v37 = vsub.s32 3, %v254_v33  ;;  %v271_v39 = vsub.s32 4, %v254_v33  ;;  %v275_v40 = vsub.s32 5, %v254_v33 }
  0x3f   : > { %v279_v41 = vsub.s32 6, %v254_v33  ;;  %v283_v42 = vsub.s32 7, %v254_v33 }
  0x40   : > { %v246_v30 = vsel %vm245_vm7, %v224_v28, %v244_v29 }
  0x41   : > { %v248_v31 = vsel %vm152_vm0, %v246_v30, 0.0 }
  0x42   : > { %249 = vadd.xlane.f32.xlu0 %v248_v31 }
  0xcb   : > { %v250_v38 = vpop.xlane.xlu0 %249 }
  0xcc   : > { %v251_v43 = vmul.f32 0.00390625, %v250_v38 }
  0xce   : > { %v1302_v44 = vrot.slane %v251_v43, %v255_v34  ;;  %v1304_v45 = vrot.slane %v251_v43, %v259_v35  ;;  %v1306_v46 = vrot.slane %v251_v43, %v263_v36  ;;  %v1308_v47 = vrot.slane %v251_v43, %v267_v37 }
  0xcf   : > { %v1310_v48 = vrot.slane %v251_v43, %v271_v39  ;;  %v1312_v49 = vrot.slane %v251_v43, %v275_v40  ;;  %v1314_v50 = vrot.slane %v251_v43, %v279_v41  ;;  %v1316_v51 = vrot.slane %v251_v43, %v283_v42 }
  0xd0   : > { %293 = vst [vmem:[%s1318_s2] sm:$0xff] %v1302_v44  ;;  %294 = vst [vmem:[%s1318_s2 + $0x8] sm:$0xff] %v1302_v44 }
  0xd1   : > { %295 = vst [vmem:[%s1318_s2 + $0x10] sm:$0xff] %v1302_v44  ;;  %296 = vst [vmem:[%s1318_s2 + $0x18] sm:$0xff] %v1302_v44 }
  0xd2   : > { %297 = vst [vmem:[%s1318_s2 + $0x20] sm:$0xff] %v1302_v44  ;;  %298 = vst [vmem:[%s1318_s2 + $0x28] sm:$0xff] %v1302_v44 }
  0xd3   : > { %299 = vst [vmem:[%s1318_s2 + $0x30] sm:$0xff] %v1302_v44  ;;  %300 = vst [vmem:[%s1318_s2 + $0x38] sm:$0xff] %v1302_v44 }
  0xd4   : > { %301 = vst [vmem:[%s1318_s2 + $0x40] sm:$0xff] %v1302_v44  ;;  %302 = vst [vmem:[%s1318_s2 + $0x48] sm:$0xff] %v1302_v44 }
  0xd5   : > { %303 = vst [vmem:[%s1318_s2 + $0x50] sm:$0xff] %v1302_v44  ;;  %304 = vst [vmem:[%s1318_s2 + $0x58] sm:$0xff] %v1302_v44 }
  0xd6   : > { %305 = vst [vmem:[%s1318_s2 + $0x60] sm:$0xff] %v1302_v44  ;;  %306 = vst [vmem:[%s1318_s2 + $0x68] sm:$0xff] %v1302_v44 }
  0xd7   : > { %307 = vst [vmem:[%s1318_s2 + $0x70] sm:$0xff] %v1302_v44  ;;  %308 = vst [vmem:[%s1318_s2 + $0x78] sm:$0xff] %v1302_v44 }
  0xd8   : > { %309 = vst [vmem:[%s1318_s2 + $0x80] sm:$0xff] %v1302_v44  ;;  %310 = vst [vmem:[%s1318_s2 + $0x88] sm:$0xff] %v1302_v44 }
  0xd9   : > { %311 = vst [vmem:[%s1318_s2 + $0x90] sm:$0xff] %v1302_v44  ;;  %312 = vst [vmem:[%s1318_s2 + $0x98] sm:$0xff] %v1302_v44 }
  0xda   : > { %313 = vst [vmem:[%s1318_s2 + $0xa0] sm:$0xff] %v1302_v44  ;;  %314 = vst [vmem:[%s1318_s2 + $0xa8] sm:$0xff] %v1302_v44 }
  0xdb   : > { %315 = vst [vmem:[%s1318_s2 + $0xb0] sm:$0xff] %v1302_v44  ;;  %316 = vst [vmem:[%s1318_s2 + $0xb8] sm:$0xff] %v1302_v44 }
  0xdc   : > { %317 = vst [vmem:[%s1318_s2 + $0xc0] sm:$0xff] %v1302_v44  ;;  %318 = vst [vmem:[%s1318_s2 + $0xc8] sm:$0xff] %v1302_v44 }
  0xdd   : > { %319 = vst [vmem:[%s1318_s2 + $0xd0] sm:$0xff] %v1302_v44  ;;  %320 = vst [vmem:[%s1318_s2 + $0xd8] sm:$0xff] %v1302_v44 }
  0xde   : > { %321 = vst [vmem:[%s1318_s2 + $0xe0] sm:$0xff] %v1302_v44  ;;  %322 = vst [vmem:[%s1318_s2 + $0xe8] sm:$0xff] %v1302_v44 }
  0xdf   : > { %323 = vst [vmem:[%s1318_s2 + $0xf0] sm:$0xff] %v1302_v44  ;;  %324 = vst [vmem:[%s1318_s2 + $0xf8] sm:$0xff] %v1302_v44 }
  0xe0   : > { %325 = vst [vmem:[%s1318_s2 + $0x100] sm:$0xff] %v1302_v44  ;;  %326 = vst [vmem:[%s1318_s2 + $0x108] sm:$0xff] %v1302_v44 }
  0xe1   : > { %327 = vst [vmem:[%s1318_s2 + $0x110] sm:$0xff] %v1302_v44  ;;  %328 = vst [vmem:[%s1318_s2 + $0x118] sm:$0xff] %v1302_v44 }
  0xe2   : > { %329 = vst [vmem:[%s1318_s2 + $0x120] sm:$0xff] %v1302_v44  ;;  %330 = vst [vmem:[%s1318_s2 + $0x128] sm:$0xff] %v1302_v44 }
  0xe3   : > { %331 = vst [vmem:[%s1318_s2 + $0x130] sm:$0xff] %v1302_v44  ;;  %332 = vst [vmem:[%s1318_s2 + $0x138] sm:$0xff] %v1302_v44 }
  0xe4   : > { %333 = vst [vmem:[%s1318_s2 + $0x140] sm:$0xff] %v1302_v44  ;;  %334 = vst [vmem:[%s1318_s2 + $0x148] sm:$0xff] %v1302_v44 }
  0xe5   : > { %335 = vst [vmem:[%s1318_s2 + $0x150] sm:$0xff] %v1302_v44  ;;  %336 = vst [vmem:[%s1318_s2 + $0x158] sm:$0xff] %v1302_v44 }
  0xe6   : > { %337 = vst [vmem:[%s1318_s2 + $0x160] sm:$0xff] %v1302_v44  ;;  %338 = vst [vmem:[%s1318_s2 + $0x168] sm:$0xff] %v1302_v44 }
  0xe7   : > { %339 = vst [vmem:[%s1318_s2 + $0x170] sm:$0xff] %v1302_v44  ;;  %340 = vst [vmem:[%s1318_s2 + $0x178] sm:$0xff] %v1302_v44 }
  0xe8   : > { %341 = vst [vmem:[%s1318_s2 + $0x180] sm:$0xff] %v1302_v44  ;;  %342 = vst [vmem:[%s1318_s2 + $0x188] sm:$0xff] %v1302_v44 }
  0xe9   : > { %343 = vst [vmem:[%s1318_s2 + $0x190] sm:$0xff] %v1302_v44  ;;  %344 = vst [vmem:[%s1318_s2 + $0x198] sm:$0xff] %v1302_v44 }
  0xea   : > { %345 = vst [vmem:[%s1318_s2 + $0x1a0] sm:$0xff] %v1302_v44  ;;  %346 = vst [vmem:[%s1318_s2 + $0x1a8] sm:$0xff] %v1302_v44 }
  0xeb   : > { %347 = vst [vmem:[%s1318_s2 + $0x1b0] sm:$0xff] %v1302_v44  ;;  %348 = vst [vmem:[%s1318_s2 + $0x1b8] sm:$0xff] %v1302_v44 }
  0xec   : > { %349 = vst [vmem:[%s1318_s2 + $0x1c0] sm:$0xff] %v1302_v44  ;;  %350 = vst [vmem:[%s1318_s2 + $0x1c8] sm:$0xff] %v1302_v44 }
  0xed   : > { %351 = vst [vmem:[%s1318_s2 + $0x1d0] sm:$0xff] %v1302_v44  ;;  %352 = vst [vmem:[%s1318_s2 + $0x1d8] sm:$0xff] %v1302_v44 }
  0xee   : > { %353 = vst [vmem:[%s1318_s2 + $0x1e0] sm:$0xff] %v1302_v44  ;;  %354 = vst [vmem:[%s1318_s2 + $0x1e8] sm:$0xff] %v1302_v44 }
  0xef   : > { %355 = vst [vmem:[%s1318_s2 + $0x1f0] sm:$0xff] %v1302_v44  ;;  %356 = vst [vmem:[%s1318_s2 + $0x1f8] sm:$0xff] %v1302_v44 }
  0xf0   : > { %357 = vst [vmem:[%s1318_s2 + $0x200] sm:$0xff] %v1302_v44  ;;  %358 = vst [vmem:[%s1318_s2 + $0x208] sm:$0xff] %v1302_v44 }
  0xf1   : > { %359 = vst [vmem:[%s1318_s2 + $0x210] sm:$0xff] %v1302_v44  ;;  %360 = vst [vmem:[%s1318_s2 + $0x218] sm:$0xff] %v1302_v44 }
  0xf2   : > { %361 = vst [vmem:[%s1318_s2 + $0x220] sm:$0xff] %v1302_v44  ;;  %362 = vst [vmem:[%s1318_s2 + $0x228] sm:$0xff] %v1302_v44 }
  0xf3   : > { %363 = vst [vmem:[%s1318_s2 + $0x230] sm:$0xff] %v1302_v44  ;;  %364 = vst [vmem:[%s1318_s2 + $0x238] sm:$0xff] %v1302_v44 }
  0xf4   : > { %365 = vst [vmem:[%s1318_s2 + $0x240] sm:$0xff] %v1302_v44  ;;  %366 = vst [vmem:[%s1318_s2 + $0x248] sm:$0xff] %v1302_v44 }
  0xf5   : > { %367 = vst [vmem:[%s1318_s2 + $0x250] sm:$0xff] %v1302_v44  ;;  %368 = vst [vmem:[%s1318_s2 + $0x258] sm:$0xff] %v1304_v45 }
  0xf6   : > { %369 = vst [vmem:[%s1318_s2 + $0x260] sm:$0xff] %v1304_v45  ;;  %370 = vst [vmem:[%s1318_s2 + $0x268] sm:$0xff] %v1304_v45 }
  0xf7   : > { %371 = vst [vmem:[%s1318_s2 + $0x270] sm:$0xff] %v1304_v45  ;;  %372 = vst [vmem:[%s1318_s2 + $0x278] sm:$0xff] %v1304_v45 }
  0xf8   : > { %373 = vst [vmem:[%s1318_s2 + $0x280] sm:$0xff] %v1304_v45  ;;  %374 = vst [vmem:[%s1318_s2 + $0x288] sm:$0xff] %v1304_v45 }
  0xf9   : > { %375 = vst [vmem:[%s1318_s2 + $0x290] sm:$0xff] %v1304_v45  ;;  %376 = vst [vmem:[%s1318_s2 + $0x298] sm:$0xff] %v1304_v45 }
  0xfa   : > { %377 = vst [vmem:[%s1318_s2 + $0x2a0] sm:$0xff] %v1304_v45  ;;  %378 = vst [vmem:[%s1318_s2 + $0x2a8] sm:$0xff] %v1304_v45 }
  0xfb   : > { %379 = vst [vmem:[%s1318_s2 + $0x2b0] sm:$0xff] %v1304_v45  ;;  %380 = vst [vmem:[%s1318_s2 + $0x2b8] sm:$0xff] %v1304_v45 }
  0xfc   : > { %381 = vst [vmem:[%s1318_s2 + $0x2c0] sm:$0xff] %v1304_v45  ;;  %382 = vst [vmem:[%s1318_s2 + $0x2c8] sm:$0xff] %v1304_v45 }
  0xfd   : > { %383 = vst [vmem:[%s1318_s2 + $0x2d0] sm:$0xff] %v1304_v45  ;;  %384 = vst [vmem:[%s1318_s2 + $0x2d8] sm:$0xff] %v1304_v45 }
  0xfe   : > { %385 = vst [vmem:[%s1318_s2 + $0x2e0] sm:$0xff] %v1304_v45  ;;  %386 = vst [vmem:[%s1318_s2 + $0x2e8] sm:$0xff] %v1304_v45 }
  0xff   : > { %387 = vst [vmem:[%s1318_s2 + $0x2f0] sm:$0xff] %v1304_v45  ;;  %388 = vst [vmem:[%s1318_s2 + $0x2f8] sm:$0xff] %v1304_v45 }
 0x100   : > { %389 = vst [vmem:[%s1318_s2 + $0x300] sm:$0xff] %v1304_v45  ;;  %390 = vst [vmem:[%s1318_s2 + $0x308] sm:$0xff] %v1304_v45 }
 0x101   : > { %391 = vst [vmem:[%s1318_s2 + $0x310] sm:$0xff] %v1304_v45  ;;  %392 = vst [vmem:[%s1318_s2 + $0x318] sm:$0xff] %v1304_v45 }
 0x102   : > { %393 = vst [vmem:[%s1318_s2 + $0x320] sm:$0xff] %v1304_v45  ;;  %394 = vst [vmem:[%s1318_s2 + $0x328] sm:$0xff] %v1304_v45 }
 0x103   : > { %395 = vst [vmem:[%s1318_s2 + $0x330] sm:$0xff] %v1304_v45  ;;  %396 = vst [vmem:[%s1318_s2 + $0x338] sm:$0xff] %v1304_v45 }
 0x104   : > { %397 = vst [vmem:[%s1318_s2 + $0x340] sm:$0xff] %v1304_v45  ;;  %398 = vst [vmem:[%s1318_s2 + $0x348] sm:$0xff] %v1304_v45 }
 0x105   : > { %399 = vst [vmem:[%s1318_s2 + $0x350] sm:$0xff] %v1304_v45  ;;  %400 = vst [vmem:[%s1318_s2 + $0x358] sm:$0xff] %v1304_v45 }
 0x106   : > { %401 = vst [vmem:[%s1318_s2 + $0x360] sm:$0xff] %v1304_v45  ;;  %402 = vst [vmem:[%s1318_s2 + $0x368] sm:$0xff] %v1304_v45 }
 0x107   : > { %403 = vst [vmem:[%s1318_s2 + $0x370] sm:$0xff] %v1304_v45  ;;  %404 = vst [vmem:[%s1318_s2 + $0x378] sm:$0xff] %v1304_v45 }
 0x108   : > { %405 = vst [vmem:[%s1318_s2 + $0x380] sm:$0xff] %v1304_v45  ;;  %406 = vst [vmem:[%s1318_s2 + $0x388] sm:$0xff] %v1304_v45 }
 0x109   : > { %407 = vst [vmem:[%s1318_s2 + $0x390] sm:$0xff] %v1304_v45  ;;  %408 = vst [vmem:[%s1318_s2 + $0x398] sm:$0xff] %v1304_v45 }
 0x10a   : > { %409 = vst [vmem:[%s1318_s2 + $0x3a0] sm:$0xff] %v1304_v45  ;;  %410 = vst [vmem:[%s1318_s2 + $0x3a8] sm:$0xff] %v1304_v45 }
 0x10b   : > { %411 = vst [vmem:[%s1318_s2 + $0x3b0] sm:$0xff] %v1304_v45  ;;  %412 = vst [vmem:[%s1318_s2 + $0x3b8] sm:$0xff] %v1304_v45 }
 0x10c   : > { %413 = vst [vmem:[%s1318_s2 + $0x3c0] sm:$0xff] %v1304_v45  ;;  %414 = vst [vmem:[%s1318_s2 + $0x3c8] sm:$0xff] %v1304_v45 }
 0x10d   : > { %415 = vst [vmem:[%s1318_s2 + $0x3d0] sm:$0xff] %v1304_v45  ;;  %416 = vst [vmem:[%s1318_s2 + $0x3d8] sm:$0xff] %v1304_v45 }
 0x10e   : > { %417 = vst [vmem:[%s1318_s2 + $0x3e0] sm:$0xff] %v1304_v45  ;;  %418 = vst [vmem:[%s1318_s2 + $0x3e8] sm:$0xff] %v1304_v45 }
 0x10f   : > { %419 = vst [vmem:[%s1318_s2 + $0x3f0] sm:$0xff] %v1304_v45  ;;  %420 = vst [vmem:[%s1318_s2 + $0x3f8] sm:$0xff] %v1304_v45 }
 0x110   : > { %421 = vst [vmem:[%s1318_s2 + $0x400] sm:$0xff] %v1304_v45  ;;  %422 = vst [vmem:[%s1318_s2 + $0x408] sm:$0xff] %v1304_v45 }
 0x111   : > { %423 = vst [vmem:[%s1318_s2 + $0x410] sm:$0xff] %v1304_v45  ;;  %424 = vst [vmem:[%s1318_s2 + $0x418] sm:$0xff] %v1304_v45 }
 0x112   : > { %425 = vst [vmem:[%s1318_s2 + $0x420] sm:$0xff] %v1304_v45  ;;  %426 = vst [vmem:[%s1318_s2 + $0x428] sm:$0xff] %v1304_v45 }
 0x113   : > { %427 = vst [vmem:[%s1318_s2 + $0x430] sm:$0xff] %v1304_v45  ;;  %428 = vst [vmem:[%s1318_s2 + $0x438] sm:$0xff] %v1304_v45 }
 0x114   : > { %429 = vst [vmem:[%s1318_s2 + $0x440] sm:$0xff] %v1304_v45  ;;  %430 = vst [vmem:[%s1318_s2 + $0x448] sm:$0xff] %v1304_v45 }
 0x115   : > { %431 = vst [vmem:[%s1318_s2 + $0x450] sm:$0xff] %v1304_v45  ;;  %432 = vst [vmem:[%s1318_s2 + $0x458] sm:$0xff] %v1304_v45 }
 0x116   : > { %433 = vst [vmem:[%s1318_s2 + $0x460] sm:$0xff] %v1304_v45  ;;  %434 = vst [vmem:[%s1318_s2 + $0x468] sm:$0xff] %v1304_v45 }
 0x117   : > { %435 = vst [vmem:[%s1318_s2 + $0x470] sm:$0xff] %v1304_v45  ;;  %436 = vst [vmem:[%s1318_s2 + $0x478] sm:$0xff] %v1304_v45 }
 0x118   : > { %437 = vst [vmem:[%s1318_s2 + $0x480] sm:$0xff] %v1304_v45  ;;  %438 = vst [vmem:[%s1318_s2 + $0x488] sm:$0xff] %v1304_v45 }
 0x119   : > { %439 = vst [vmem:[%s1318_s2 + $0x490] sm:$0xff] %v1304_v45  ;;  %440 = vst [vmem:[%s1318_s2 + $0x498] sm:$0xff] %v1304_v45 }
 0x11a   : > { %441 = vst [vmem:[%s1318_s2 + $0x4a0] sm:$0xff] %v1304_v45  ;;  %442 = vst [vmem:[%s1318_s2 + $0x4a8] sm:$0xff] %v1304_v45 }
 0x11b   : > { %443 = vst [vmem:[%s1318_s2 + $0x4b0] sm:$0xff] %v1306_v46  ;;  %444 = vst [vmem:[%s1318_s2 + $0x4b8] sm:$0xff] %v1306_v46 }
 0x11c   : > { %445 = vst [vmem:[%s1318_s2 + $0x4c0] sm:$0xff] %v1306_v46  ;;  %446 = vst [vmem:[%s1318_s2 + $0x4c8] sm:$0xff] %v1306_v46 }
 0x11d   : > { %447 = vst [vmem:[%s1318_s2 + $0x4d0] sm:$0xff] %v1306_v46  ;;  %448 = vst [vmem:[%s1318_s2 + $0x4d8] sm:$0xff] %v1306_v46 }
 0x11e   : > { %449 = vst [vmem:[%s1318_s2 + $0x4e0] sm:$0xff] %v1306_v46  ;;  %450 = vst [vmem:[%s1318_s2 + $0x4e8] sm:$0xff] %v1306_v46 }
 0x11f   : > { %451 = vst [vmem:[%s1318_s2 + $0x4f0] sm:$0xff] %v1306_v46  ;;  %452 = vst [vmem:[%s1318_s2 + $0x4f8] sm:$0xff] %v1306_v46 }
 0x120   : > { %453 = vst [vmem:[%s1318_s2 + $0x500] sm:$0xff] %v1306_v46  ;;  %454 = vst [vmem:[%s1318_s2 + $0x508] sm:$0xff] %v1306_v46 }
 0x121   : > { %455 = vst [vmem:[%s1318_s2 + $0x510] sm:$0xff] %v1306_v46  ;;  %456 = vst [vmem:[%s1318_s2 + $0x518] sm:$0xff] %v1306_v46 }
 0x122   : > { %457 = vst [vmem:[%s1318_s2 + $0x520] sm:$0xff] %v1306_v46  ;;  %458 = vst [vmem:[%s1318_s2 + $0x528] sm:$0xff] %v1306_v46 }
 0x123   : > { %459 = vst [vmem:[%s1318_s2 + $0x530] sm:$0xff] %v1306_v46  ;;  %460 = vst [vmem:[%s1318_s2 + $0x538] sm:$0xff] %v1306_v46 }
 0x124   : > { %461 = vst [vmem:[%s1318_s2 + $0x540] sm:$0xff] %v1306_v46  ;;  %462 = vst [vmem:[%s1318_s2 + $0x548] sm:$0xff] %v1306_v46 }
 0x125   : > { %463 = vst [vmem:[%s1318_s2 + $0x550] sm:$0xff] %v1306_v46  ;;  %464 = vst [vmem:[%s1318_s2 + $0x558] sm:$0xff] %v1306_v46 }
 0x126   : > { %465 = vst [vmem:[%s1318_s2 + $0x560] sm:$0xff] %v1306_v46  ;;  %466 = vst [vmem:[%s1318_s2 + $0x568] sm:$0xff] %v1306_v46 }
 0x127   : > { %467 = vst [vmem:[%s1318_s2 + $0x570] sm:$0xff] %v1306_v46  ;;  %468 = vst [vmem:[%s1318_s2 + $0x578] sm:$0xff] %v1306_v46 }
 0x128   : > { %469 = vst [vmem:[%s1318_s2 + $0x580] sm:$0xff] %v1306_v46  ;;  %470 = vst [vmem:[%s1318_s2 + $0x588] sm:$0xff] %v1306_v46 }
 0x129   : > { %471 = vst [vmem:[%s1318_s2 + $0x590] sm:$0xff] %v1306_v46  ;;  %472 = vst [vmem:[%s1318_s2 + $0x598] sm:$0xff] %v1306_v46 }
 0x12a   : > { %473 = vst [vmem:[%s1318_s2 + $0x5a0] sm:$0xff] %v1306_v46  ;;  %474 = vst [vmem:[%s1318_s2 + $0x5a8] sm:$0xff] %v1306_v46 }
 0x12b   : > { %475 = vst [vmem:[%s1318_s2 + $0x5b0] sm:$0xff] %v1306_v46  ;;  %476 = vst [vmem:[%s1318_s2 + $0x5b8] sm:$0xff] %v1306_v46 }
 0x12c   : > { %477 = vst [vmem:[%s1318_s2 + $0x5c0] sm:$0xff] %v1306_v46  ;;  %478 = vst [vmem:[%s1318_s2 + $0x5c8] sm:$0xff] %v1306_v46 }
 0x12d   : > { %479 = vst [vmem:[%s1318_s2 + $0x5d0] sm:$0xff] %v1306_v46  ;;  %480 = vst [vmem:[%s1318_s2 + $0x5d8] sm:$0xff] %v1306_v46 }
 0x12e   : > { %481 = vst [vmem:[%s1318_s2 + $0x5e0] sm:$0xff] %v1306_v46  ;;  %482 = vst [vmem:[%s1318_s2 + $0x5e8] sm:$0xff] %v1306_v46 }
 0x12f   : > { %483 = vst [vmem:[%s1318_s2 + $0x5f0] sm:$0xff] %v1306_v46  ;;  %484 = vst [vmem:[%s1318_s2 + $0x5f8] sm:$0xff] %v1306_v46 }
 0x130   : > { %485 = vst [vmem:[%s1318_s2 + $0x600] sm:$0xff] %v1306_v46  ;;  %486 = vst [vmem:[%s1318_s2 + $0x608] sm:$0xff] %v1306_v46 }
 0x131   : > { %487 = vst [vmem:[%s1318_s2 + $0x610] sm:$0xff] %v1306_v46  ;;  %488 = vst [vmem:[%s1318_s2 + $0x618] sm:$0xff] %v1306_v46 }
 0x132   : > { %489 = vst [vmem:[%s1318_s2 + $0x620] sm:$0xff] %v1306_v46  ;;  %490 = vst [vmem:[%s1318_s2 + $0x628] sm:$0xff] %v1306_v46 }
 0x133   : > { %491 = vst [vmem:[%s1318_s2 + $0x630] sm:$0xff] %v1306_v46  ;;  %492 = vst [vmem:[%s1318_s2 + $0x638] sm:$0xff] %v1306_v46 }
 0x134   : > { %493 = vst [vmem:[%s1318_s2 + $0x640] sm:$0xff] %v1306_v46  ;;  %494 = vst [vmem:[%s1318_s2 + $0x648] sm:$0xff] %v1306_v46 }
 0x135   : > { %495 = vst [vmem:[%s1318_s2 + $0x650] sm:$0xff] %v1306_v46  ;;  %496 = vst [vmem:[%s1318_s2 + $0x658] sm:$0xff] %v1306_v46 }
 0x136   : > { %497 = vst [vmem:[%s1318_s2 + $0x660] sm:$0xff] %v1306_v46  ;;  %498 = vst [vmem:[%s1318_s2 + $0x668] sm:$0xff] %v1306_v46 }
 0x137   : > { %499 = vst [vmem:[%s1318_s2 + $0x670] sm:$0xff] %v1306_v46  ;;  %500 = vst [vmem:[%s1318_s2 + $0x678] sm:$0xff] %v1306_v46 }
 0x138   : > { %501 = vst [vmem:[%s1318_s2 + $0x680] sm:$0xff] %v1306_v46  ;;  %502 = vst [vmem:[%s1318_s2 + $0x688] sm:$0xff] %v1306_v46 }
 0x139   : > { %503 = vst [vmem:[%s1318_s2 + $0x690] sm:$0xff] %v1306_v46  ;;  %504 = vst [vmem:[%s1318_s2 + $0x698] sm:$0xff] %v1306_v46 }
 0x13a   : > { %505 = vst [vmem:[%s1318_s2 + $0x6a0] sm:$0xff] %v1306_v46  ;;  %506 = vst [vmem:[%s1318_s2 + $0x6a8] sm:$0xff] %v1306_v46 }
 0x13b   : > { %507 = vst [vmem:[%s1318_s2 + $0x6b0] sm:$0xff] %v1306_v46  ;;  %508 = vst [vmem:[%s1318_s2 + $0x6b8] sm:$0xff] %v1306_v46 }
 0x13c   : > { %509 = vst [vmem:[%s1318_s2 + $0x6c0] sm:$0xff] %v1306_v46  ;;  %510 = vst [vmem:[%s1318_s2 + $0x6c8] sm:$0xff] %v1306_v46 }
 0x13d   : > { %511 = vst [vmem:[%s1318_s2 + $0x6d0] sm:$0xff] %v1306_v46  ;;  %512 = vst [vmem:[%s1318_s2 + $0x6d8] sm:$0xff] %v1306_v46 }
 0x13e   : > { %513 = vst [vmem:[%s1318_s2 + $0x6e0] sm:$0xff] %v1306_v46  ;;  %514 = vst [vmem:[%s1318_s2 + $0x6e8] sm:$0xff] %v1306_v46 }
 0x13f   : > { %515 = vst [vmem:[%s1318_s2 + $0x6f0] sm:$0xff] %v1306_v46  ;;  %516 = vst [vmem:[%s1318_s2 + $0x6f8] sm:$0xff] %v1306_v46 }
 0x140   : > { %517 = vst [vmem:[%s1318_s2 + $0x700] sm:$0xff] %v1306_v46  ;;  %518 = vst [vmem:[%s1318_s2 + $0x708] sm:$0xff] %v1308_v47 }
 0x141   : > { %519 = vst [vmem:[%s1318_s2 + $0x710] sm:$0xff] %v1308_v47  ;;  %520 = vst [vmem:[%s1318_s2 + $0x718] sm:$0xff] %v1308_v47 }
 0x142   : > { %521 = vst [vmem:[%s1318_s2 + $0x720] sm:$0xff] %v1308_v47  ;;  %522 = vst [vmem:[%s1318_s2 + $0x728] sm:$0xff] %v1308_v47 }
 0x143   : > { %523 = vst [vmem:[%s1318_s2 + $0x730] sm:$0xff] %v1308_v47  ;;  %524 = vst [vmem:[%s1318_s2 + $0x738] sm:$0xff] %v1308_v47 }
 0x144   : > { %525 = vst [vmem:[%s1318_s2 + $0x740] sm:$0xff] %v1308_v47  ;;  %526 = vst [vmem:[%s1318_s2 + $0x748] sm:$0xff] %v1308_v47 }
 0x145   : > { %527 = vst [vmem:[%s1318_s2 + $0x750] sm:$0xff] %v1308_v47  ;;  %528 = vst [vmem:[%s1318_s2 + $0x758] sm:$0xff] %v1308_v47 }
 0x146   : > { %529 = vst [vmem:[%s1318_s2 + $0x760] sm:$0xff] %v1308_v47  ;;  %530 = vst [vmem:[%s1318_s2 + $0x768] sm:$0xff] %v1308_v47 }
 0x147   : > { %531 = vst [vmem:[%s1318_s2 + $0x770] sm:$0xff] %v1308_v47  ;;  %532 = vst [vmem:[%s1318_s2 + $0x778] sm:$0xff] %v1308_v47 }
 0x148   : > { %533 = vst [vmem:[%s1318_s2 + $0x780] sm:$0xff] %v1308_v47  ;;  %534 = vst [vmem:[%s1318_s2 + $0x788] sm:$0xff] %v1308_v47 }
 0x149   : > { %535 = vst [vmem:[%s1318_s2 + $0x790] sm:$0xff] %v1308_v47  ;;  %536 = vst [vmem:[%s1318_s2 + $0x798] sm:$0xff] %v1308_v47 }
 0x14a   : > { %537 = vst [vmem:[%s1318_s2 + $0x7a0] sm:$0xff] %v1308_v47  ;;  %538 = vst [vmem:[%s1318_s2 + $0x7a8] sm:$0xff] %v1308_v47 }
 0x14b   : > { %539 = vst [vmem:[%s1318_s2 + $0x7b0] sm:$0xff] %v1308_v47  ;;  %540 = vst [vmem:[%s1318_s2 + $0x7b8] sm:$0xff] %v1308_v47 }
 0x14c   : > { %541 = vst [vmem:[%s1318_s2 + $0x7c0] sm:$0xff] %v1308_v47  ;;  %542 = vst [vmem:[%s1318_s2 + $0x7c8] sm:$0xff] %v1308_v47 }
 0x14d   : > { %543 = vst [vmem:[%s1318_s2 + $0x7d0] sm:$0xff] %v1308_v47  ;;  %544 = vst [vmem:[%s1318_s2 + $0x7d8] sm:$0xff] %v1308_v47 }
 0x14e   : > { %545 = vst [vmem:[%s1318_s2 + $0x7e0] sm:$0xff] %v1308_v47  ;;  %546 = vst [vmem:[%s1318_s2 + $0x7e8] sm:$0xff] %v1308_v47 }
 0x14f   : > { %547 = vst [vmem:[%s1318_s2 + $0x7f0] sm:$0xff] %v1308_v47  ;;  %548 = vst [vmem:[%s1318_s2 + $0x7f8] sm:$0xff] %v1308_v47 }
 0x150   : > { %549 = vst [vmem:[%s1318_s2 + $0x800] sm:$0xff] %v1308_v47  ;;  %550 = vst [vmem:[%s1318_s2 + $0x808] sm:$0xff] %v1308_v47 }
 0x151   : > { %551 = vst [vmem:[%s1318_s2 + $0x810] sm:$0xff] %v1308_v47  ;;  %552 = vst [vmem:[%s1318_s2 + $0x818] sm:$0xff] %v1308_v47 }
 0x152   : > { %553 = vst [vmem:[%s1318_s2 + $0x820] sm:$0xff] %v1308_v47  ;;  %554 = vst [vmem:[%s1318_s2 + $0x828] sm:$0xff] %v1308_v47 }
 0x153   : > { %555 = vst [vmem:[%s1318_s2 + $0x830] sm:$0xff] %v1308_v47  ;;  %556 = vst [vmem:[%s1318_s2 + $0x838] sm:$0xff] %v1308_v47 }
 0x154   : > { %557 = vst [vmem:[%s1318_s2 + $0x840] sm:$0xff] %v1308_v47  ;;  %558 = vst [vmem:[%s1318_s2 + $0x848] sm:$0xff] %v1308_v47 }
 0x155   : > { %559 = vst [vmem:[%s1318_s2 + $0x850] sm:$0xff] %v1308_v47  ;;  %560 = vst [vmem:[%s1318_s2 + $0x858] sm:$0xff] %v1308_v47 }
 0x156   : > { %561 = vst [vmem:[%s1318_s2 + $0x860] sm:$0xff] %v1308_v47  ;;  %562 = vst [vmem:[%s1318_s2 + $0x868] sm:$0xff] %v1308_v47 }
 0x157   : > { %563 = vst [vmem:[%s1318_s2 + $0x870] sm:$0xff] %v1308_v47  ;;  %564 = vst [vmem:[%s1318_s2 + $0x878] sm:$0xff] %v1308_v47 }
 0x158   : > { %565 = vst [vmem:[%s1318_s2 + $0x880] sm:$0xff] %v1308_v47  ;;  %566 = vst [vmem:[%s1318_s2 + $0x888] sm:$0xff] %v1308_v47 }
 0x159   : > { %567 = vst [vmem:[%s1318_s2 + $0x890] sm:$0xff] %v1308_v47  ;;  %568 = vst [vmem:[%s1318_s2 + $0x898] sm:$0xff] %v1308_v47 }
 0x15a   : > { %569 = vst [vmem:[%s1318_s2 + $0x8a0] sm:$0xff] %v1308_v47  ;;  %570 = vst [vmem:[%s1318_s2 + $0x8a8] sm:$0xff] %v1308_v47 }
 0x15b   : > { %571 = vst [vmem:[%s1318_s2 + $0x8b0] sm:$0xff] %v1308_v47  ;;  %572 = vst [vmem:[%s1318_s2 + $0x8b8] sm:$0xff] %v1308_v47 }
 0x15c   : > { %573 = vst [vmem:[%s1318_s2 + $0x8c0] sm:$0xff] %v1308_v47  ;;  %574 = vst [vmem:[%s1318_s2 + $0x8c8] sm:$0xff] %v1308_v47 }
 0x15d   : > { %575 = vst [vmem:[%s1318_s2 + $0x8d0] sm:$0xff] %v1308_v47  ;;  %576 = vst [vmem:[%s1318_s2 + $0x8d8] sm:$0xff] %v1308_v47 }
 0x15e   : > { %577 = vst [vmem:[%s1318_s2 + $0x8e0] sm:$0xff] %v1308_v47  ;;  %578 = vst [vmem:[%s1318_s2 + $0x8e8] sm:$0xff] %v1308_v47 }
 0x15f   : > { %579 = vst [vmem:[%s1318_s2 + $0x8f0] sm:$0xff] %v1308_v47  ;;  %580 = vst [vmem:[%s1318_s2 + $0x8f8] sm:$0xff] %v1308_v47 }
 0x160   : > { %581 = vst [vmem:[%s1318_s2 + $0x900] sm:$0xff] %v1308_v47  ;;  %582 = vst [vmem:[%s1318_s2 + $0x908] sm:$0xff] %v1308_v47 }
 0x161   : > { %583 = vst [vmem:[%s1318_s2 + $0x910] sm:$0xff] %v1308_v47  ;;  %584 = vst [vmem:[%s1318_s2 + $0x918] sm:$0xff] %v1308_v47 }
 0x162   : > { %585 = vst [vmem:[%s1318_s2 + $0x920] sm:$0xff] %v1308_v47  ;;  %586 = vst [vmem:[%s1318_s2 + $0x928] sm:$0xff] %v1308_v47 }
 0x163   : > { %587 = vst [vmem:[%s1318_s2 + $0x930] sm:$0xff] %v1308_v47  ;;  %588 = vst [vmem:[%s1318_s2 + $0x938] sm:$0xff] %v1308_v47 }
 0x164   : > { %589 = vst [vmem:[%s1318_s2 + $0x940] sm:$0xff] %v1308_v47  ;;  %590 = vst [vmem:[%s1318_s2 + $0x948] sm:$0xff] %v1308_v47 }
 0x165   : > { %591 = vst [vmem:[%s1318_s2 + $0x950] sm:$0xff] %v1308_v47  ;;  %592 = vst [vmem:[%s1318_s2 + $0x958] sm:$0xff] %v1308_v47 }
 0x166   : > { %593 = vst [vmem:[%s1318_s2 + $0x960] sm:$0xff] %v1310_v48  ;;  %594 = vst [vmem:[%s1318_s2 + $0x968] sm:$0xff] %v1310_v48 }
 0x167   : > { %595 = vst [vmem:[%s1318_s2 + $0x970] sm:$0xff] %v1310_v48  ;;  %596 = vst [vmem:[%s1318_s2 + $0x978] sm:$0xff] %v1310_v48 }
 0x168   : > { %597 = vst [vmem:[%s1318_s2 + $0x980] sm:$0xff] %v1310_v48  ;;  %598 = vst [vmem:[%s1318_s2 + $0x988] sm:$0xff] %v1310_v48 }
 0x169   : > { %599 = vst [vmem:[%s1318_s2 + $0x990] sm:$0xff] %v1310_v48  ;;  %600 = vst [vmem:[%s1318_s2 + $0x998] sm:$0xff] %v1310_v48 }
 0x16a   : > { %601 = vst [vmem:[%s1318_s2 + $0x9a0] sm:$0xff] %v1310_v48  ;;  %602 = vst [vmem:[%s1318_s2 + $0x9a8] sm:$0xff] %v1310_v48 }
 0x16b   : > { %603 = vst [vmem:[%s1318_s2 + $0x9b0] sm:$0xff] %v1310_v48  ;;  %604 = vst [vmem:[%s1318_s2 + $0x9b8] sm:$0xff] %v1310_v48 }
 0x16c   : > { %605 = vst [vmem:[%s1318_s2 + $0x9c0] sm:$0xff] %v1310_v48  ;;  %606 = vst [vmem:[%s1318_s2 + $0x9c8] sm:$0xff] %v1310_v48 }
 0x16d   : > { %607 = vst [vmem:[%s1318_s2 + $0x9d0] sm:$0xff] %v1310_v48  ;;  %608 = vst [vmem:[%s1318_s2 + $0x9d8] sm:$0xff] %v1310_v48 }
 0x16e   : > { %609 = vst [vmem:[%s1318_s2 + $0x9e0] sm:$0xff] %v1310_v48  ;;  %610 = vst [vmem:[%s1318_s2 + $0x9e8] sm:$0xff] %v1310_v48 }
 0x16f   : > { %611 = vst [vmem:[%s1318_s2 + $0x9f0] sm:$0xff] %v1310_v48  ;;  %612 = vst [vmem:[%s1318_s2 + $0x9f8] sm:$0xff] %v1310_v48 }
 0x170   : > { %613 = vst [vmem:[%s1318_s2 + $0xa00] sm:$0xff] %v1310_v48  ;;  %614 = vst [vmem:[%s1318_s2 + $0xa08] sm:$0xff] %v1310_v48 }
 0x171   : > { %615 = vst [vmem:[%s1318_s2 + $0xa10] sm:$0xff] %v1310_v48  ;;  %616 = vst [vmem:[%s1318_s2 + $0xa18] sm:$0xff] %v1310_v48 }
 0x172   : > { %617 = vst [vmem:[%s1318_s2 + $0xa20] sm:$0xff] %v1310_v48  ;;  %618 = vst [vmem:[%s1318_s2 + $0xa28] sm:$0xff] %v1310_v48 }
 0x173   : > { %619 = vst [vmem:[%s1318_s2 + $0xa30] sm:$0xff] %v1310_v48  ;;  %620 = vst [vmem:[%s1318_s2 + $0xa38] sm:$0xff] %v1310_v48 }
 0x174   : > { %621 = vst [vmem:[%s1318_s2 + $0xa40] sm:$0xff] %v1310_v48  ;;  %622 = vst [vmem:[%s1318_s2 + $0xa48] sm:$0xff] %v1310_v48 }
 0x175   : > { %623 = vst [vmem:[%s1318_s2 + $0xa50] sm:$0xff] %v1310_v48  ;;  %624 = vst [vmem:[%s1318_s2 + $0xa58] sm:$0xff] %v1310_v48 }
 0x176   : > { %625 = vst [vmem:[%s1318_s2 + $0xa60] sm:$0xff] %v1310_v48  ;;  %626 = vst [vmem:[%s1318_s2 + $0xa68] sm:$0xff] %v1310_v48 }
 0x177   : > { %627 = vst [vmem:[%s1318_s2 + $0xa70] sm:$0xff] %v1310_v48  ;;  %628 = vst [vmem:[%s1318_s2 + $0xa78] sm:$0xff] %v1310_v48 }
 0x178   : > { %629 = vst [vmem:[%s1318_s2 + $0xa80] sm:$0xff] %v1310_v48  ;;  %630 = vst [vmem:[%s1318_s2 + $0xa88] sm:$0xff] %v1310_v48 }
 0x179   : > { %631 = vst [vmem:[%s1318_s2 + $0xa90] sm:$0xff] %v1310_v48  ;;  %632 = vst [vmem:[%s1318_s2 + $0xa98] sm:$0xff] %v1310_v48 }
 0x17a   : > { %633 = vst [vmem:[%s1318_s2 + $0xaa0] sm:$0xff] %v1310_v48  ;;  %634 = vst [vmem:[%s1318_s2 + $0xaa8] sm:$0xff] %v1310_v48 }
 0x17b   : > { %635 = vst [vmem:[%s1318_s2 + $0xab0] sm:$0xff] %v1310_v48  ;;  %636 = vst [vmem:[%s1318_s2 + $0xab8] sm:$0xff] %v1310_v48 }
 0x17c   : > { %637 = vst [vmem:[%s1318_s2 + $0xac0] sm:$0xff] %v1310_v48  ;;  %638 = vst [vmem:[%s1318_s2 + $0xac8] sm:$0xff] %v1310_v48 }
 0x17d   : > { %639 = vst [vmem:[%s1318_s2 + $0xad0] sm:$0xff] %v1310_v48  ;;  %640 = vst [vmem:[%s1318_s2 + $0xad8] sm:$0xff] %v1310_v48 }
 0x17e   : > { %641 = vst [vmem:[%s1318_s2 + $0xae0] sm:$0xff] %v1310_v48  ;;  %642 = vst [vmem:[%s1318_s2 + $0xae8] sm:$0xff] %v1310_v48 }
 0x17f   : > { %643 = vst [vmem:[%s1318_s2 + $0xaf0] sm:$0xff] %v1310_v48  ;;  %644 = vst [vmem:[%s1318_s2 + $0xaf8] sm:$0xff] %v1310_v48 }
 0x180   : > { %645 = vst [vmem:[%s1318_s2 + $0xb00] sm:$0xff] %v1310_v48  ;;  %646 = vst [vmem:[%s1318_s2 + $0xb08] sm:$0xff] %v1310_v48 }
 0x181   : > { %647 = vst [vmem:[%s1318_s2 + $0xb10] sm:$0xff] %v1310_v48  ;;  %648 = vst [vmem:[%s1318_s2 + $0xb18] sm:$0xff] %v1310_v48 }
 0x182   : > { %649 = vst [vmem:[%s1318_s2 + $0xb20] sm:$0xff] %v1310_v48  ;;  %650 = vst [vmem:[%s1318_s2 + $0xb28] sm:$0xff] %v1310_v48 }
 0x183   : > { %651 = vst [vmem:[%s1318_s2 + $0xb30] sm:$0xff] %v1310_v48  ;;  %652 = vst [vmem:[%s1318_s2 + $0xb38] sm:$0xff] %v1310_v48 }
 0x184   : > { %653 = vst [vmem:[%s1318_s2 + $0xb40] sm:$0xff] %v1310_v48  ;;  %654 = vst [vmem:[%s1318_s2 + $0xb48] sm:$0xff] %v1310_v48 }
 0x185   : > { %655 = vst [vmem:[%s1318_s2 + $0xb50] sm:$0xff] %v1310_v48  ;;  %656 = vst [vmem:[%s1318_s2 + $0xb58] sm:$0xff] %v1310_v48 }
 0x186   : > { %657 = vst [vmem:[%s1318_s2 + $0xb60] sm:$0xff] %v1310_v48  ;;  %658 = vst [vmem:[%s1318_s2 + $0xb68] sm:$0xff] %v1310_v48 }
 0x187   : > { %659 = vst [vmem:[%s1318_s2 + $0xb70] sm:$0xff] %v1310_v48  ;;  %660 = vst [vmem:[%s1318_s2 + $0xb78] sm:$0xff] %v1310_v48 }
 0x188   : > { %661 = vst [vmem:[%s1318_s2 + $0xb80] sm:$0xff] %v1310_v48  ;;  %662 = vst [vmem:[%s1318_s2 + $0xb88] sm:$0xff] %v1310_v48 }
 0x189   : > { %663 = vst [vmem:[%s1318_s2 + $0xb90] sm:$0xff] %v1310_v48  ;;  %664 = vst [vmem:[%s1318_s2 + $0xb98] sm:$0xff] %v1310_v48 }
 0x18a   : > { %665 = vst [vmem:[%s1318_s2 + $0xba0] sm:$0xff] %v1310_v48  ;;  %666 = vst [vmem:[%s1318_s2 + $0xba8] sm:$0xff] %v1310_v48 }
 0x18b   : > { %667 = vst [vmem:[%s1318_s2 + $0xbb0] sm:$0xff] %v1310_v48  ;;  %668 = vst [vmem:[%s1318_s2 + $0xbb8] sm:$0xff] %v1312_v49 }
 0x18c   : > { %669 = vst [vmem:[%s1318_s2 + $0xbc0] sm:$0xff] %v1312_v49  ;;  %670 = vst [vmem:[%s1318_s2 + $0xbc8] sm:$0xff] %v1312_v49 }
 0x18d   : > { %671 = vst [vmem:[%s1318_s2 + $0xbd0] sm:$0xff] %v1312_v49  ;;  %672 = vst [vmem:[%s1318_s2 + $0xbd8] sm:$0xff] %v1312_v49 }
 0x18e   : > { %673 = vst [vmem:[%s1318_s2 + $0xbe0] sm:$0xff] %v1312_v49  ;;  %674 = vst [vmem:[%s1318_s2 + $0xbe8] sm:$0xff] %v1312_v49 }
 0x18f   : > { %675 = vst [vmem:[%s1318_s2 + $0xbf0] sm:$0xff] %v1312_v49  ;;  %676 = vst [vmem:[%s1318_s2 + $0xbf8] sm:$0xff] %v1312_v49 }
 0x190   : > { %677 = vst [vmem:[%s1318_s2 + $0xc00] sm:$0xff] %v1312_v49  ;;  %678 = vst [vmem:[%s1318_s2 + $0xc08] sm:$0xff] %v1312_v49 }
 0x191   : > { %679 = vst [vmem:[%s1318_s2 + $0xc10] sm:$0xff] %v1312_v49  ;;  %680 = vst [vmem:[%s1318_s2 + $0xc18] sm:$0xff] %v1312_v49 }
 0x192   : > { %681 = vst [vmem:[%s1318_s2 + $0xc20] sm:$0xff] %v1312_v49  ;;  %682 = vst [vmem:[%s1318_s2 + $0xc28] sm:$0xff] %v1312_v49 }
 0x193   : > { %683 = vst [vmem:[%s1318_s2 + $0xc30] sm:$0xff] %v1312_v49  ;;  %684 = vst [vmem:[%s1318_s2 + $0xc38] sm:$0xff] %v1312_v49 }
 0x194   : > { %685 = vst [vmem:[%s1318_s2 + $0xc40] sm:$0xff] %v1312_v49  ;;  %686 = vst [vmem:[%s1318_s2 + $0xc48] sm:$0xff] %v1312_v49 }
 0x195   : > { %687 = vst [vmem:[%s1318_s2 + $0xc50] sm:$0xff] %v1312_v49  ;;  %688 = vst [vmem:[%s1318_s2 + $0xc58] sm:$0xff] %v1312_v49 }
 0x196   : > { %689 = vst [vmem:[%s1318_s2 + $0xc60] sm:$0xff] %v1312_v49  ;;  %690 = vst [vmem:[%s1318_s2 + $0xc68] sm:$0xff] %v1312_v49 }
 0x197   : > { %691 = vst [vmem:[%s1318_s2 + $0xc70] sm:$0xff] %v1312_v49  ;;  %692 = vst [vmem:[%s1318_s2 + $0xc78] sm:$0xff] %v1312_v49 }
 0x198   : > { %693 = vst [vmem:[%s1318_s2 + $0xc80] sm:$0xff] %v1312_v49  ;;  %694 = vst [vmem:[%s1318_s2 + $0xc88] sm:$0xff] %v1312_v49 }
 0x199   : > { %695 = vst [vmem:[%s1318_s2 + $0xc90] sm:$0xff] %v1312_v49  ;;  %696 = vst [vmem:[%s1318_s2 + $0xc98] sm:$0xff] %v1312_v49 }
 0x19a   : > { %697 = vst [vmem:[%s1318_s2 + $0xca0] sm:$0xff] %v1312_v49  ;;  %698 = vst [vmem:[%s1318_s2 + $0xca8] sm:$0xff] %v1312_v49 }
 0x19b   : > { %699 = vst [vmem:[%s1318_s2 + $0xcb0] sm:$0xff] %v1312_v49  ;;  %700 = vst [vmem:[%s1318_s2 + $0xcb8] sm:$0xff] %v1312_v49 }
 0x19c   : > { %701 = vst [vmem:[%s1318_s2 + $0xcc0] sm:$0xff] %v1312_v49  ;;  %702 = vst [vmem:[%s1318_s2 + $0xcc8] sm:$0xff] %v1312_v49 }
 0x19d   : > { %703 = vst [vmem:[%s1318_s2 + $0xcd0] sm:$0xff] %v1312_v49  ;;  %704 = vst [vmem:[%s1318_s2 + $0xcd8] sm:$0xff] %v1312_v49 }
 0x19e   : > { %705 = vst [vmem:[%s1318_s2 + $0xce0] sm:$0xff] %v1312_v49  ;;  %706 = vst [vmem:[%s1318_s2 + $0xce8] sm:$0xff] %v1312_v49 }
 0x19f   : > { %707 = vst [vmem:[%s1318_s2 + $0xcf0] sm:$0xff] %v1312_v49  ;;  %708 = vst [vmem:[%s1318_s2 + $0xcf8] sm:$0xff] %v1312_v49 }
 0x1a0   : > { %709 = vst [vmem:[%s1318_s2 + $0xd00] sm:$0xff] %v1312_v49  ;;  %710 = vst [vmem:[%s1318_s2 + $0xd08] sm:$0xff] %v1312_v49 }
 0x1a1   : > { %711 = vst [vmem:[%s1318_s2 + $0xd10] sm:$0xff] %v1312_v49  ;;  %712 = vst [vmem:[%s1318_s2 + $0xd18] sm:$0xff] %v1312_v49 }
 0x1a2   : > { %713 = vst [vmem:[%s1318_s2 + $0xd20] sm:$0xff] %v1312_v49  ;;  %714 = vst [vmem:[%s1318_s2 + $0xd28] sm:$0xff] %v1312_v49 }
 0x1a3   : > { %715 = vst [vmem:[%s1318_s2 + $0xd30] sm:$0xff] %v1312_v49  ;;  %716 = vst [vmem:[%s1318_s2 + $0xd38] sm:$0xff] %v1312_v49 }
 0x1a4   : > { %717 = vst [vmem:[%s1318_s2 + $0xd40] sm:$0xff] %v1312_v49  ;;  %718 = vst [vmem:[%s1318_s2 + $0xd48] sm:$0xff] %v1312_v49 }
 0x1a5   : > { %719 = vst [vmem:[%s1318_s2 + $0xd50] sm:$0xff] %v1312_v49  ;;  %720 = vst [vmem:[%s1318_s2 + $0xd58] sm:$0xff] %v1312_v49 }
 0x1a6   : > { %721 = vst [vmem:[%s1318_s2 + $0xd60] sm:$0xff] %v1312_v49  ;;  %722 = vst [vmem:[%s1318_s2 + $0xd68] sm:$0xff] %v1312_v49 }
 0x1a7   : > { %723 = vst [vmem:[%s1318_s2 + $0xd70] sm:$0xff] %v1312_v49  ;;  %724 = vst [vmem:[%s1318_s2 + $0xd78] sm:$0xff] %v1312_v49 }
 0x1a8   : > { %725 = vst [vmem:[%s1318_s2 + $0xd80] sm:$0xff] %v1312_v49  ;;  %726 = vst [vmem:[%s1318_s2 + $0xd88] sm:$0xff] %v1312_v49 }
 0x1a9   : > { %727 = vst [vmem:[%s1318_s2 + $0xd90] sm:$0xff] %v1312_v49  ;;  %728 = vst [vmem:[%s1318_s2 + $0xd98] sm:$0xff] %v1312_v49 }
 0x1aa   : > { %729 = vst [vmem:[%s1318_s2 + $0xda0] sm:$0xff] %v1312_v49  ;;  %730 = vst [vmem:[%s1318_s2 + $0xda8] sm:$0xff] %v1312_v49 }
 0x1ab   : > { %731 = vst [vmem:[%s1318_s2 + $0xdb0] sm:$0xff] %v1312_v49  ;;  %732 = vst [vmem:[%s1318_s2 + $0xdb8] sm:$0xff] %v1312_v49 }
 0x1ac   : > { %733 = vst [vmem:[%s1318_s2 + $0xdc0] sm:$0xff] %v1312_v49  ;;  %734 = vst [vmem:[%s1318_s2 + $0xdc8] sm:$0xff] %v1312_v49 }
 0x1ad   : > { %735 = vst [vmem:[%s1318_s2 + $0xdd0] sm:$0xff] %v1312_v49  ;;  %736 = vst [vmem:[%s1318_s2 + $0xdd8] sm:$0xff] %v1312_v49 }
 0x1ae   : > { %737 = vst [vmem:[%s1318_s2 + $0xde0] sm:$0xff] %v1312_v49  ;;  %738 = vst [vmem:[%s1318_s2 + $0xde8] sm:$0xff] %v1312_v49 }
 0x1af   : > { %739 = vst [vmem:[%s1318_s2 + $0xdf0] sm:$0xff] %v1312_v49  ;;  %740 = vst [vmem:[%s1318_s2 + $0xdf8] sm:$0xff] %v1312_v49 }
 0x1b0   : > { %741 = vst [vmem:[%s1318_s2 + $0xe00] sm:$0xff] %v1312_v49  ;;  %742 = vst [vmem:[%s1318_s2 + $0xe08] sm:$0xff] %v1312_v49 }
 0x1b1   : > { %743 = vst [vmem:[%s1318_s2 + $0xe10] sm:$0xff] %v1314_v50  ;;  %744 = vst [vmem:[%s1318_s2 + $0xe18] sm:$0xff] %v1314_v50 }
 0x1b2   : > { %745 = vst [vmem:[%s1318_s2 + $0xe20] sm:$0xff] %v1314_v50  ;;  %746 = vst [vmem:[%s1318_s2 + $0xe28] sm:$0xff] %v1314_v50 }
 0x1b3   : > { %747 = vst [vmem:[%s1318_s2 + $0xe30] sm:$0xff] %v1314_v50  ;;  %748 = vst [vmem:[%s1318_s2 + $0xe38] sm:$0xff] %v1314_v50 }
 0x1b4   : > { %749 = vst [vmem:[%s1318_s2 + $0xe40] sm:$0xff] %v1314_v50  ;;  %750 = vst [vmem:[%s1318_s2 + $0xe48] sm:$0xff] %v1314_v50 }
 0x1b5   : > { %751 = vst [vmem:[%s1318_s2 + $0xe50] sm:$0xff] %v1314_v50  ;;  %752 = vst [vmem:[%s1318_s2 + $0xe58] sm:$0xff] %v1314_v50 }
 0x1b6   : > { %753 = vst [vmem:[%s1318_s2 + $0xe60] sm:$0xff] %v1314_v50  ;;  %754 = vst [vmem:[%s1318_s2 + $0xe68] sm:$0xff] %v1314_v50 }
 0x1b7   : > { %755 = vst [vmem:[%s1318_s2 + $0xe70] sm:$0xff] %v1314_v50  ;;  %756 = vst [vmem:[%s1318_s2 + $0xe78] sm:$0xff] %v1314_v50 }
 0x1b8   : > { %757 = vst [vmem:[%s1318_s2 + $0xe80] sm:$0xff] %v1314_v50  ;;  %758 = vst [vmem:[%s1318_s2 + $0xe88] sm:$0xff] %v1314_v50 }
 0x1b9   : > { %759 = vst [vmem:[%s1318_s2 + $0xe90] sm:$0xff] %v1314_v50  ;;  %760 = vst [vmem:[%s1318_s2 + $0xe98] sm:$0xff] %v1314_v50 }
 0x1ba   : > { %761 = vst [vmem:[%s1318_s2 + $0xea0] sm:$0xff] %v1314_v50  ;;  %762 = vst [vmem:[%s1318_s2 + $0xea8] sm:$0xff] %v1314_v50 }
 0x1bb   : > { %763 = vst [vmem:[%s1318_s2 + $0xeb0] sm:$0xff] %v1314_v50  ;;  %764 = vst [vmem:[%s1318_s2 + $0xeb8] sm:$0xff] %v1314_v50 }
 0x1bc   : > { %765 = vst [vmem:[%s1318_s2 + $0xec0] sm:$0xff] %v1314_v50  ;;  %766 = vst [vmem:[%s1318_s2 + $0xec8] sm:$0xff] %v1314_v50 }
 0x1bd   : > { %767 = vst [vmem:[%s1318_s2 + $0xed0] sm:$0xff] %v1314_v50  ;;  %768 = vst [vmem:[%s1318_s2 + $0xed8] sm:$0xff] %v1314_v50 }
 0x1be   : > { %769 = vst [vmem:[%s1318_s2 + $0xee0] sm:$0xff] %v1314_v50  ;;  %770 = vst [vmem:[%s1318_s2 + $0xee8] sm:$0xff] %v1314_v50 }
 0x1bf   : > { %771 = vst [vmem:[%s1318_s2 + $0xef0] sm:$0xff] %v1314_v50  ;;  %772 = vst [vmem:[%s1318_s2 + $0xef8] sm:$0xff] %v1314_v50 }
 0x1c0   : > { %773 = vst [vmem:[%s1318_s2 + $0xf00] sm:$0xff] %v1314_v50  ;;  %774 = vst [vmem:[%s1318_s2 + $0xf08] sm:$0xff] %v1314_v50 }
 0x1c1   : > { %775 = vst [vmem:[%s1318_s2 + $0xf10] sm:$0xff] %v1314_v50  ;;  %776 = vst [vmem:[%s1318_s2 + $0xf18] sm:$0xff] %v1314_v50 }
 0x1c2   : > { %777 = vst [vmem:[%s1318_s2 + $0xf20] sm:$0xff] %v1314_v50  ;;  %778 = vst [vmem:[%s1318_s2 + $0xf28] sm:$0xff] %v1314_v50 }
 0x1c3   : > { %779 = vst [vmem:[%s1318_s2 + $0xf30] sm:$0xff] %v1314_v50  ;;  %780 = vst [vmem:[%s1318_s2 + $0xf38] sm:$0xff] %v1314_v50 }
 0x1c4   : > { %781 = vst [vmem:[%s1318_s2 + $0xf40] sm:$0xff] %v1314_v50  ;;  %782 = vst [vmem:[%s1318_s2 + $0xf48] sm:$0xff] %v1314_v50 }
 0x1c5   : > { %783 = vst [vmem:[%s1318_s2 + $0xf50] sm:$0xff] %v1314_v50  ;;  %784 = vst [vmem:[%s1318_s2 + $0xf58] sm:$0xff] %v1314_v50 }
 0x1c6   : > { %785 = vst [vmem:[%s1318_s2 + $0xf60] sm:$0xff] %v1314_v50  ;;  %786 = vst [vmem:[%s1318_s2 + $0xf68] sm:$0xff] %v1314_v50 }
 0x1c7   : > { %787 = vst [vmem:[%s1318_s2 + $0xf70] sm:$0xff] %v1314_v50  ;;  %788 = vst [vmem:[%s1318_s2 + $0xf78] sm:$0xff] %v1314_v50 }
 0x1c8   : > { %789 = vst [vmem:[%s1318_s2 + $0xf80] sm:$0xff] %v1314_v50  ;;  %790 = vst [vmem:[%s1318_s2 + $0xf88] sm:$0xff] %v1314_v50 }
 0x1c9   : > { %791 = vst [vmem:[%s1318_s2 + $0xf90] sm:$0xff] %v1314_v50  ;;  %792 = vst [vmem:[%s1318_s2 + $0xf98] sm:$0xff] %v1314_v50 }
 0x1ca   : > { %793 = vst [vmem:[%s1318_s2 + $0xfa0] sm:$0xff] %v1314_v50  ;;  %794 = vst [vmem:[%s1318_s2 + $0xfa8] sm:$0xff] %v1314_v50 }
 0x1cb   : > { %795 = vst [vmem:[%s1318_s2 + $0xfb0] sm:$0xff] %v1314_v50  ;;  %796 = vst [vmem:[%s1318_s2 + $0xfb8] sm:$0xff] %v1314_v50 }
 0x1cc   : > { %797 = vst [vmem:[%s1318_s2 + $0xfc0] sm:$0xff] %v1314_v50  ;;  %798 = vst [vmem:[%s1318_s2 + $0xfc8] sm:$0xff] %v1314_v50 }
 0x1cd   : > { %799 = vst [vmem:[%s1318_s2 + $0xfd0] sm:$0xff] %v1314_v50  ;;  %800 = vst [vmem:[%s1318_s2 + $0xfd8] sm:$0xff] %v1314_v50 }
 0x1ce   : > { %801 = vst [vmem:[%s1318_s2 + $0xfe0] sm:$0xff] %v1314_v50  ;;  %802 = vst [vmem:[%s1318_s2 + $0xfe8] sm:$0xff] %v1314_v50 }
 0x1cf   : > { %803 = vst [vmem:[%s1318_s2 + $0xff0] sm:$0xff] %v1314_v50  ;;  %804 = vst [vmem:[%s1318_s2 + $0xff8] sm:$0xff] %v1314_v50 }
 0x1d0   : > { %805 = vst [vmem:[%s1318_s2 + $0x1000] sm:$0xff] %v1314_v50  ;;  %806 = vst [vmem:[%s1318_s2 + $0x1008] sm:$0xff] %v1314_v50 }
 0x1d1   : > { %807 = vst [vmem:[%s1318_s2 + $0x1010] sm:$0xff] %v1314_v50  ;;  %808 = vst [vmem:[%s1318_s2 + $0x1018] sm:$0xff] %v1314_v50 }
 0x1d2   : > { %809 = vst [vmem:[%s1318_s2 + $0x1020] sm:$0xff] %v1314_v50  ;;  %810 = vst [vmem:[%s1318_s2 + $0x1028] sm:$0xff] %v1314_v50 }
 0x1d3   : > { %811 = vst [vmem:[%s1318_s2 + $0x1030] sm:$0xff] %v1314_v50  ;;  %812 = vst [vmem:[%s1318_s2 + $0x1038] sm:$0xff] %v1314_v50 }
 0x1d4   : > { %813 = vst [vmem:[%s1318_s2 + $0x1040] sm:$0xff] %v1314_v50  ;;  %814 = vst [vmem:[%s1318_s2 + $0x1048] sm:$0xff] %v1314_v50 }
 0x1d5   : > { %815 = vst [vmem:[%s1318_s2 + $0x1050] sm:$0xff] %v1314_v50  ;;  %816 = vst [vmem:[%s1318_s2 + $0x1058] sm:$0xff] %v1314_v50 }
 0x1d6   : > { %817 = vst [vmem:[%s1318_s2 + $0x1060] sm:$0xff] %v1314_v50  ;;  %818 = vst [vmem:[%s1318_s2 + $0x1068] sm:$0xff] %v1316_v51 }
 0x1d7   : > { %819 = vst [vmem:[%s1318_s2 + $0x1070] sm:$0xff] %v1316_v51  ;;  %820 = vst [vmem:[%s1318_s2 + $0x1078] sm:$0xff] %v1316_v51 }
 0x1d8   : > { %821 = vst [vmem:[%s1318_s2 + $0x1080] sm:$0xff] %v1316_v51  ;;  %822 = vst [vmem:[%s1318_s2 + $0x1088] sm:$0xff] %v1316_v51 }
 0x1d9   : > { %823 = vst [vmem:[%s1318_s2 + $0x1090] sm:$0xff] %v1316_v51  ;;  %824 = vst [vmem:[%s1318_s2 + $0x1098] sm:$0xff] %v1316_v51 }
 0x1da   : > { %825 = vst [vmem:[%s1318_s2 + $0x10a0] sm:$0xff] %v1316_v51  ;;  %826 = vst [vmem:[%s1318_s2 + $0x10a8] sm:$0xff] %v1316_v51 }
 0x1db   : > { %827 = vst [vmem:[%s1318_s2 + $0x10b0] sm:$0xff] %v1316_v51  ;;  %828 = vst [vmem:[%s1318_s2 + $0x10b8] sm:$0xff] %v1316_v51 }
 0x1dc   : > { %829 = vst [vmem:[%s1318_s2 + $0x10c0] sm:$0xff] %v1316_v51  ;;  %830 = vst [vmem:[%s1318_s2 + $0x10c8] sm:$0xff] %v1316_v51 }
 0x1dd   : > { %831 = vst [vmem:[%s1318_s2 + $0x10d0] sm:$0xff] %v1316_v51  ;;  %832 = vst [vmem:[%s1318_s2 + $0x10d8] sm:$0xff] %v1316_v51 }
 0x1de   : > { %833 = vst [vmem:[%s1318_s2 + $0x10e0] sm:$0xff] %v1316_v51  ;;  %834 = vst [vmem:[%s1318_s2 + $0x10e8] sm:$0xff] %v1316_v51 }
 0x1df   : > { %835 = vst [vmem:[%s1318_s2 + $0x10f0] sm:$0xff] %v1316_v51  ;;  %836 = vst [vmem:[%s1318_s2 + $0x10f8] sm:$0xff] %v1316_v51 }
 0x1e0   : > { %837 = vst [vmem:[%s1318_s2 + $0x1100] sm:$0xff] %v1316_v51  ;;  %838 = vst [vmem:[%s1318_s2 + $0x1108] sm:$0xff] %v1316_v51 }
 0x1e1   : > { %839 = vst [vmem:[%s1318_s2 + $0x1110] sm:$0xff] %v1316_v51  ;;  %840 = vst [vmem:[%s1318_s2 + $0x1118] sm:$0xff] %v1316_v51 }
 0x1e2   : > { %841 = vst [vmem:[%s1318_s2 + $0x1120] sm:$0xff] %v1316_v51  ;;  %842 = vst [vmem:[%s1318_s2 + $0x1128] sm:$0xff] %v1316_v51 }
 0x1e3   : > { %843 = vst [vmem:[%s1318_s2 + $0x1130] sm:$0xff] %v1316_v51  ;;  %844 = vst [vmem:[%s1318_s2 + $0x1138] sm:$0xff] %v1316_v51 }
 0x1e4   : > { %845 = vst [vmem:[%s1318_s2 + $0x1140] sm:$0xff] %v1316_v51  ;;  %846 = vst [vmem:[%s1318_s2 + $0x1148] sm:$0xff] %v1316_v51 }
 0x1e5   : > { %847 = vst [vmem:[%s1318_s2 + $0x1150] sm:$0xff] %v1316_v51  ;;  %848 = vst [vmem:[%s1318_s2 + $0x1158] sm:$0xff] %v1316_v51 }
 0x1e6   : > { %849 = vst [vmem:[%s1318_s2 + $0x1160] sm:$0xff] %v1316_v51  ;;  %850 = vst [vmem:[%s1318_s2 + $0x1168] sm:$0xff] %v1316_v51 }
 0x1e7   : > { %851 = vst [vmem:[%s1318_s2 + $0x1170] sm:$0xff] %v1316_v51  ;;  %852 = vst [vmem:[%s1318_s2 + $0x1178] sm:$0xff] %v1316_v51 }
 0x1e8   : > { %853 = vst [vmem:[%s1318_s2 + $0x1180] sm:$0xff] %v1316_v51  ;;  %854 = vst [vmem:[%s1318_s2 + $0x1188] sm:$0xff] %v1316_v51 }
 0x1e9   : > { %855 = vst [vmem:[%s1318_s2 + $0x1190] sm:$0xff] %v1316_v51  ;;  %856 = vst [vmem:[%s1318_s2 + $0x1198] sm:$0xff] %v1316_v51 }
 0x1ea   : > { %857 = vst [vmem:[%s1318_s2 + $0x11a0] sm:$0xff] %v1316_v51  ;;  %858 = vst [vmem:[%s1318_s2 + $0x11a8] sm:$0xff] %v1316_v51 }
 0x1eb   : > { %859 = vst [vmem:[%s1318_s2 + $0x11b0] sm:$0xff] %v1316_v51  ;;  %860 = vst [vmem:[%s1318_s2 + $0x11b8] sm:$0xff] %v1316_v51 }
 0x1ec   : > { %861 = vst [vmem:[%s1318_s2 + $0x11c0] sm:$0xff] %v1316_v51  ;;  %862 = vst [vmem:[%s1318_s2 + $0x11c8] sm:$0xff] %v1316_v51 }
 0x1ed   : > { %863 = vst [vmem:[%s1318_s2 + $0x11d0] sm:$0xff] %v1316_v51  ;;  %864 = vst [vmem:[%s1318_s2 + $0x11d8] sm:$0xff] %v1316_v51 }
 0x1ee   : > { %865 = vst [vmem:[%s1318_s2 + $0x11e0] sm:$0xff] %v1316_v51  ;;  %866 = vst [vmem:[%s1318_s2 + $0x11e8] sm:$0xff] %v1316_v51 }
 0x1ef   : > { %867 = vst [vmem:[%s1318_s2 + $0x11f0] sm:$0xff] %v1316_v51  ;;  %868 = vst [vmem:[%s1318_s2 + $0x11f8] sm:$0xff] %v1316_v51 }
 0x1f0   : > { %869 = vst [vmem:[%s1318_s2 + $0x1200] sm:$0xff] %v1316_v51  ;;  %870 = vst [vmem:[%s1318_s2 + $0x1208] sm:$0xff] %v1316_v51 }
 0x1f1   : > { %871 = vst [vmem:[%s1318_s2 + $0x1210] sm:$0xff] %v1316_v51  ;;  %872 = vst [vmem:[%s1318_s2 + $0x1218] sm:$0xff] %v1316_v51 }
 0x1f2   : > { %873 = vst [vmem:[%s1318_s2 + $0x1220] sm:$0xff] %v1316_v51  ;;  %874 = vst [vmem:[%s1318_s2 + $0x1228] sm:$0xff] %v1316_v51 }
 0x1f3   : > { %875 = vst [vmem:[%s1318_s2 + $0x1230] sm:$0xff] %v1316_v51  ;;  %876 = vst [vmem:[%s1318_s2 + $0x1238] sm:$0xff] %v1316_v51 }
 0x1f4   : > { %877 = vst [vmem:[%s1318_s2 + $0x1240] sm:$0xff] %v1316_v51  ;;  %878 = vst [vmem:[%s1318_s2 + $0x1248] sm:$0xff] %v1316_v51 }
 0x1f5   : > { %879 = vst [vmem:[%s1318_s2 + $0x1250] sm:$0xff] %v1316_v51  ;;  %880 = vst [vmem:[%s1318_s2 + $0x1258] sm:$0xff] %v1316_v51 }
 0x1f6   : > { %881 = vst [vmem:[%s1318_s2 + $0x1260] sm:$0xff] %v1316_v51  ;;  %882 = vst [vmem:[%s1318_s2 + $0x1268] sm:$0xff] %v1316_v51 }
 0x1f7   : > { %883 = vst [vmem:[%s1318_s2 + $0x1270] sm:$0xff] %v1316_v51  ;;  %884 = vst [vmem:[%s1318_s2 + $0x1278] sm:$0xff] %v1316_v51 }
 0x1f8   : > { %885 = vst [vmem:[%s1318_s2 + $0x1280] sm:$0xff] %v1316_v51  ;;  %886 = vst [vmem:[%s1318_s2 + $0x1288] sm:$0xff] %v1316_v51 }
 0x1f9   : > { %887 = vst [vmem:[%s1318_s2 + $0x1290] sm:$0xff] %v1316_v51  ;;  %888 = vst [vmem:[%s1318_s2 + $0x1298] sm:$0xff] %v1316_v51 }
 0x1fa   : > { %889 = vst [vmem:[%s1318_s2 + $0x12a0] sm:$0xff] %v1316_v51  ;;  %890 = vst [vmem:[%s1318_s2 + $0x12a8] sm:$0xff] %v1316_v51 }
 0x1fb   : > { %891 = vst [vmem:[%s1318_s2 + $0x12b0] sm:$0xff] %v1316_v51  ;;  %892 = vst [vmem:[%s1318_s2 + $0x12b8] sm:$0xff] %v1316_v51 }
 0x1fc   : > { %s921_s4 = sshll.u32 %s1318_s2, 4  ;;  %s1042_s5 = smul.u32 9600, %s1174_s9  ;;  %s922_s4 = int_to_ptr.vmem [resolvable:$true] %s921_s4 }
 0x1fd   : > { %s1187_s17 = smov 9600   ;;  %s1188_s20 = smov 38400  }
 0x1fe   : > { %s910_s15 = scalar_lea.hbm %s2564_s1, %s1042_s5  ;;  %1024 = sst [smem:[#allocation7]] (%p1244_p4), %s1187_s17 }
 0x1ff   : > { %1025 = sst [smem:[#allocation7 + $0x1]] (%p1244_p4), %s1188_s20  ;;  %s1189_s21 = smov 15  }
 0x200   : > { %1026 = sst [smem:[#allocation7 + $0x2]] (%p1244_p4), %s1189_s21  ;;  %s1190_s22 = smov 640  }
 0x201   : > { %1027 = sst [smem:[#allocation7 + $0x3]] (%p1244_p4), %s1190_s22  ;;  %s1191_s9 = smov 40  }
 0x202   : > { %1028 = sst [smem:[#allocation7 + $0x4]] (%p1244_p4), %s1190_s22  ;;  %s1192_s23 = smov 131072  }
 0x203   : > { %1029 = sst [smem:[#allocation7 + $0x5]] (%p1244_p4), %s1191_s9  ;;  %s1193_s24 = smov 0  }
 0x204   : > { %1030 = dma.general (%p1244_p4), %s922_s4, 76800, %s910_s15, %s894_s3, %s1192_s23, [#allocation7], %s1193_s24, 0  }
 0x205 PF: > { %p1043_p10 = scmp.ge.s32.totalorder %s1182_s11, 2  ;;  %s949_s25 = sand.u32 1, %s1162_s6  }
 0x206   : > { %s950_s26 = scalar_lea.sflag [#allocation4], %s949_s25 }
 0x207   : > { %p1037_p11 = pnand %p1043_p10, %p1251_p8 }
 0x209   : > { %p1038_p12 = pneg %p1037_p11 }
 0x20b   : > { %1157 = dma.done.wait (%p1038_p12), %s950_s26, 76800  }
 0x20c   : > { %1159 = vsyncadd (%p1038_p12), %s950_s26, 4294890496  ;;  %s15_s11 = sadd.s32 1, %s1182_s11   ;;  %s2569_s6 = smov %s1166_s7 }
 0x20d   : > { %p12_p13 = scmp.ge.s32.totalorder %s15_s11, 6   ;;  %s2570_s7 = smov %s1170_s8 }
 0x20e   : > { %s2571_s8 = smov %s1257_s19  ;;  %s2572_s9 = smov %s1178_s10 }
 0x20f   : > { %s2573_s10 = smov %s2575_s14  ;;  %14 = sbr.rel (!%p12_p13) target bundleno = 5 (0x5), region = 67 }
 0x214   :  { %955 = vsyncpa [#allocation3], 1 }
 0x215   :  { %957 = vsyncpa [#allocation3 + $0x1], 1 }
 0x216   :  { %958 = vsyncpa [#allocation4], 1 }
 0x217   :  { %960 = vsyncpa [#allocation4 + $0x1], 1 }

</bundles_post_ra>
